<compile_context>
chip_gen: v5e
topology: v5e:2x2
jax: 0.10.0
libtpu: 0.0.40
codegen_flags: <defaults>
</compile_context>

<pallas_src>
import jax
import jax.numpy as jnp
from jax.experimental import pallas as pl
from jax.experimental.pallas import tpu as pltpu


def _round_up(x, m):
    return ((x + m - 1) // m) * m


def _fused_kernel(w_ref, b_ref, x_ref, v8_ref, v21_ref):
    """Fused 1x1 ConvTranspose2d + collapsed elementwise chain.

    w_ref : (9,) f32 SMEM   pre-scaled weight:  w'[i*3+o] = 3 * W[i, o]
    b_ref : (3,) f32 SMEM   pre-scaled bias:    b'[o]     = 3 * b[o] + 9
    x_ref : (nb, 3, TR, 128) f32 VMEM block  (batch, in-channel, row, lane)
    """
    # Hoist all 12 SMEM scalar reads out of the (unrolled) channel loop.
    w = [w_ref[i] for i in range(9)]
    b = [b_ref[i] for i in range(3)]
    x0 = x_ref[:, 0]          # (nb, TR, 128) dense tile per input channel
    x1 = x_ref[:, 1]
    x2 = x_ref[:, 2]
    for o in range(3):
        # u == v3 = 3*(W.x + bias) + 9, computed as pre-scaled VPU FMAs.
        u = w[o] * x0 + w[3 + o] * x1 + w[6 + o] * x2 + b[o]
        r = jnp.maximum(u, 0.0)                 # == v4 (all later relus no-op)
        v8_ref[:, o] = 3.0 * r + 12.0           # == v8
        v21_ref[:, o] = 3.0 * r - 6.0           # == v21


def _choose_tiling(N, rows):
    """Pick (nb, tile_r, rows_pad) so blocks are large and the grid has >=2
    steps when the workload allows (keeps both v7x TensorCores busy)."""
    TARGET_ROWS = 1024                     # ~1.5 MiB/block at 3 ch f32
    if rows <= TARGET_ROWS:
        tile_r = rows                      # full dim -> always a legal block
        rows_pad = rows
        # Fold batch into the block so each DMA is big, but keep >= 2 grid
        # steps when N >= 2 so both v7x TensorCores get a share.
        want = max(1, -(-TARGET_ROWS // max(rows, 1)))     # ceil(1024/rows)
        cap = want if N < 2 else min(want, max(1, N // 2))
        nb = 1
        for d in range(1, min(cap, N) + 1):                # largest divisor
            if N % d == 0:
                nb = d
        # v7x: if the grid would collapse to (1,1), split the row axis when it
        # can be split into 8-aligned halves.
        if N // nb == 1 and tile_r % 16 == 0 and tile_r >= 16:
            tile_r //= 2
    else:
        nb = 1
        rows8 = _round_up(rows, 8)
        # Prefer a >=512-row divisor of rows8 (no extra padding); otherwise pad
        # rows up to a multiple of 512 rather than degrading to tiny tiles.
        tile_r = 0
        t = min(TARGET_ROWS, rows8)
        t -= t % 8
        while t >= 512:
            if rows8 % t == 0:
                tile_r = t
                break
            t -= 8
        if tile_r:
            rows_pad = rows8
        else:
            tile_r = 512
            rows_pad = _round_up(rows, 512)
    return nb, tile_r, rows_pad


def model_forward(x_nchw, weight, bias, *, out_dtype=jnp.float32):
    """x_nchw: (N, 3, H, W) f32.
    weight: (3, 3) = W[in, out]  (ConvTranspose2d weight with the trailing 1x1
    kernel dims squeezed; orientation must stay [in, out]).
    bias: (3,).
    """
    N, C, H, W = x_nchw.shape
    assert C == 3
    HW = H * W

    # Lane-align the flattened spatial axis and view each channel as dense
    # (rows, 128) tiles. The reshape is free (contiguous). NOTE: when
    # HW % 128 != 0 the jnp.pad below and the tail slice in unflatten() are
    # full HBM copy passes (not free); aligned HW pays nothing.
    hw128 = _round_up(HW, 128)
    rows = hw128 // 128
    nb, tile_r, rows_pad = _choose_tiling(N, rows)
    hw_pad = rows_pad * 128

    x_flat = x_nchw.reshape(N, C, HW)
    if hw_pad != HW:
        # TODO(synk): could be replaced by in-kernel masked stores on the
        # ragged tail block to avoid the extra pad/slice HBM passes.
        x_flat = jnp.pad(x_flat, ((0, 0), (0, 0), (0, hw_pad - HW)))
    x4 = x_flat.reshape(N, C, rows_pad, 128)

    # Fold the affine constants into the 9 scalar weights / 3 biases (free).
    w_s = (3.0 * jnp.asarray(weight, jnp.float32)).reshape(-1)   # (9,), [i*3+o]
    b_s = 3.0 * jnp.asarray(bias, jnp.float32) + 9.0             # (3,)

    grid = (N // nb, rows_pad // tile_r)
    n_elems = N * C * hw_pad
    cost = pl.CostEstimate(
        flops=11 * n_elems,                 # ~11 VPU ops per output element
        transcendentals=0,
        bytes_accessed=n_elems * 4 * (1 + 2 * jnp.dtype(out_dtype).itemsize // 4
                                      if out_dtype == jnp.float32 else 3),
    )

    block_in = pl.BlockSpec((nb, C, tile_r, 128), lambda n, j: (n, 0, j, 0))
    block_out = pl.BlockSpec((nb, C, tile_r, 128), lambda n, j: (n, 0, j, 0))

    v8_p, v21_p = pl.pallas_call(
        _fused_kernel,
        out_shape=(
            jax.ShapeDtypeStruct((N, C, rows_pad, 128), out_dtype),
            jax.ShapeDtypeStruct((N, C, rows_pad, 128), out_dtype),
        ),
        grid=grid,
        in_specs=[
            pl.BlockSpec(memory_space=pltpu.MemorySpace.SMEM),   # weight (9,)
            pl.BlockSpec(memory_space=pltpu.MemorySpace.SMEM),   # bias   (3,)
            block_in,
        ],
        out_specs=(block_out, block_out),
        compiler_params=pltpu.CompilerParams(
            dimension_semantics=("parallel", "parallel"),
        ),
        cost_estimate=cost,
    )(w_s, b_s, x4)

    def unflatten(y):
        y = y.reshape(N, C, hw_pad)
        if hw_pad != HW:
            y = y[:, :, :HW]
        return y.reshape(N, C, H, W)        # free reshape back to NCHW

    return unflatten(v8_p), unflatten(v21_p)


def _reference(x_nchw, weight, bias):
    # pure-JAX reference implementing the original (un-collapsed) chain
    v1 = jnp.einsum("nihw,io->nohw", x_nchw, weight) + bias[None, :, None, None]
    v2 = v1 + 3.0
    v3 = v2 * 3.0
    v4 = jnp.maximum(v3, 0.0)
    v5 = v4 + 3.0
    v6 = jnp.maximum(v5, 0.0)
    v7 = v6 * 3.0
    v8 = v7 + 3.0
    v14 = v7 - 3.0
    v15 = jnp.maximum(v14, 0.0)
    v16 = v15 - 3.0
    v17 = jnp.maximum(v16, 0.0)
    v18 = v17 - 3.0
    v19 = jnp.maximum(v18, 0.0)
    v20 = v19 - 3.0
    v21 = v20 - 3.0
    return v8, v21


if __name__ == "__main__":
    key = jax.random.PRNGKey(0)
    k1, k2, k3 = jax.random.split(key, 3)

    N, C, H, W = 2, 3, 16, 16
    x = jax.random.normal(k1, (N, C, H, W), jnp.float32)

    # deterministic ConvTranspose2d(3,3,1) parameters (weight[in, out], bias[out])
    bound = 1.0 / (C ** 0.5)
    weight = jax.random.uniform(k2, (C, C), jnp.float32, -bound, bound)
    bias = jax.random.uniform(k3, (C,), jnp.float32, -bound, bound)

    v8, v21 = model_forward(x, weight, bias)
    v8 = jax.block_until_ready(v8)
    v21 = jax.block_until_ready(v21)

    r8, r21 = _reference(x, weight, bias)
    assert jnp.allclose(v8, r8, rtol=1e-5, atol=1e-5), "v8 mismatch"
    assert jnp.allclose(v21, r21, rtol=1e-5, atol=1e-5), "v21 mismatch"

    print("KERNEL_OK")
</pallas_src>

<mosaic_0001>
module attributes {stable_mosaic.version = 11 : i64} {
  func.func @_fused_kernel(%arg0: i32, %arg1: i32, %arg2: memref<9xf32, #tpu.memory_space<smem>>, %arg3: memref<3xf32, #tpu.memory_space<smem>>, %arg4: memref<1x3x2x128xf32, #tpu.memory_space<vmem>>, %arg5: memref<1x3x2x128xf32, #tpu.memory_space<vmem>>, %arg6: memref<1x3x2x128xf32, #tpu.memory_space<vmem>>) attributes {dimension_semantics = [#tpu.dimension_semantics<parallel>, #tpu.dimension_semantics<parallel>], iteration_bounds = array<i64: 2, 1>, scalar_prefetch = 0 : i64, scratch_operands = 0 : i64, tpu.core_type = #tpu.core_type<tc>, window_params = [{transform_indices = @transform_0, window_bounds = array<i64: 9>}, {transform_indices = @transform_1, window_bounds = array<i64: 3>}, {transform_indices = @transform_2, window_bounds = array<i64: 1, 3, 2, 128>}, {transform_indices = @transform_3, window_bounds = array<i64: 1, 3, 2, 128>}, {transform_indices = @transform_4, window_bounds = array<i64: 1, 3, 2, 128>}]} {
    %c0 = arith.constant 0 : index
    %0 = memref.load %arg2[%c0] : memref<9xf32, #tpu.memory_space<smem>>
    %c1 = arith.constant 1 : index
    %1 = memref.load %arg2[%c1] : memref<9xf32, #tpu.memory_space<smem>>
    %c2 = arith.constant 2 : index
    %2 = memref.load %arg2[%c2] : memref<9xf32, #tpu.memory_space<smem>>
    %c3 = arith.constant 3 : index
    %3 = memref.load %arg2[%c3] : memref<9xf32, #tpu.memory_space<smem>>
    %c4 = arith.constant 4 : index
    %4 = memref.load %arg2[%c4] : memref<9xf32, #tpu.memory_space<smem>>
    %c5 = arith.constant 5 : index
    %5 = memref.load %arg2[%c5] : memref<9xf32, #tpu.memory_space<smem>>
    %c6 = arith.constant 6 : index
    %6 = memref.load %arg2[%c6] : memref<9xf32, #tpu.memory_space<smem>>
    %c7 = arith.constant 7 : index
    %7 = memref.load %arg2[%c7] : memref<9xf32, #tpu.memory_space<smem>>
    %c8 = arith.constant 8 : index
    %8 = memref.load %arg2[%c8] : memref<9xf32, #tpu.memory_space<smem>>
    %c0_0 = arith.constant 0 : index
    %9 = memref.load %arg3[%c0_0] : memref<3xf32, #tpu.memory_space<smem>>
    %c1_1 = arith.constant 1 : index
    %10 = memref.load %arg3[%c1_1] : memref<3xf32, #tpu.memory_space<smem>>
    %c2_2 = arith.constant 2 : index
    %11 = memref.load %arg3[%c2_2] : memref<3xf32, #tpu.memory_space<smem>>
    %c0_3 = arith.constant 0 : index
    %c0_4 = arith.constant 0 : index
    %c0_5 = arith.constant 0 : index
    %c0_6 = arith.constant 0 : index
    %12 = vector.load %arg4[%c0_3, %c0_4, %c0_5, %c0_6] : memref<1x3x2x128xf32, #tpu.memory_space<vmem>>, vector<1x1x2x128xf32>
    %13 = vector.shape_cast %12 : vector<1x1x2x128xf32> to vector<1x2x128xf32>
    %c0_7 = arith.constant 0 : index
    %c1_8 = arith.constant 1 : index
    %c0_9 = arith.constant 0 : index
    %c0_10 = arith.constant 0 : index
    %14 = vector.load %arg4[%c0_7, %c1_8, %c0_9, %c0_10] : memref<1x3x2x128xf32, #tpu.memory_space<vmem>>, vector<1x1x2x128xf32>
    %15 = vector.shape_cast %14 : vector<1x1x2x128xf32> to vector<1x2x128xf32>
    %c0_11 = arith.constant 0 : index
    %c2_12 = arith.constant 2 : index
    %c0_13 = arith.constant 0 : index
    %c0_14 = arith.constant 0 : index
    %16 = vector.load %arg4[%c0_11, %c2_12, %c0_13, %c0_14] : memref<1x3x2x128xf32, #tpu.memory_space<vmem>>, vector<1x1x2x128xf32>
    %17 = vector.shape_cast %16 : vector<1x1x2x128xf32> to vector<1x2x128xf32>
    %18 = vector.broadcast %0 : f32 to vector<1x2x128xf32>
    %19 = arith.mulf %18, %13 : vector<1x2x128xf32>
    %20 = vector.broadcast %3 : f32 to vector<1x2x128xf32>
    %21 = arith.mulf %20, %15 : vector<1x2x128xf32>
    %22 = arith.addf %19, %21 : vector<1x2x128xf32>
    %23 = vector.broadcast %6 : f32 to vector<1x2x128xf32>
    %24 = arith.mulf %23, %17 : vector<1x2x128xf32>
    %25 = arith.addf %22, %24 : vector<1x2x128xf32>
    %26 = vector.broadcast %9 : f32 to vector<1x2x128xf32>
    %27 = arith.addf %25, %26 : vector<1x2x128xf32>
    %cst = arith.constant 0.000000e+00 : f32
    %28 = vector.broadcast %cst : f32 to vector<1x2x128xf32>
    %29 = arith.maximumf %27, %28 : vector<1x2x128xf32>
    %cst_15 = arith.constant 3.000000e+00 : f32
    %30 = vector.broadcast %cst_15 : f32 to vector<1x2x128xf32>
    %31 = arith.mulf %30, %29 : vector<1x2x128xf32>
    %cst_16 = arith.constant 1.200000e+01 : f32
    %32 = vector.broadcast %cst_16 : f32 to vector<1x2x128xf32>
    %33 = arith.addf %31, %32 : vector<1x2x128xf32>
    %c0_17 = arith.constant 0 : index
    %c0_18 = arith.constant 0 : index
    %c0_19 = arith.constant 0 : index
    %c0_20 = arith.constant 0 : index
    %34 = vector.load %arg5[%c0_17, %c0_18, %c0_19, %c0_20] : memref<1x3x2x128xf32, #tpu.memory_space<vmem>>, vector<1x1x2x128xf32>
    %35 = vector.shape_cast %34 : vector<1x1x2x128xf32> to vector<1x2x128xf32>
    %36 = vector.shape_cast %33 : vector<1x2x128xf32> to vector<1x1x2x128xf32>
    tpu.vector_store %arg5[%c0_17, %c0_18, %c0_19, %c0_20], %36 {strides = array<i32>} : memref<1x3x2x128xf32, #tpu.memory_space<vmem>>, vector<1x1x2x128xf32>,
    %cst_21 = arith.constant 3.000000e+00 : f32
    %37 = vector.broadcast %cst_21 : f32 to vector<1x2x128xf32>
    %38 = arith.mulf %37, %29 : vector<1x2x128xf32>
    %cst_22 = arith.constant 6.000000e+00 : f32
    %39 = vector.broadcast %cst_22 : f32 to vector<1x2x128xf32>
    %40 = arith.subf %38, %39 : vector<1x2x128xf32>
    %c0_23 = arith.constant 0 : index
    %c0_24 = arith.constant 0 : index
    %c0_25 = arith.constant 0 : index
    %c0_26 = arith.constant 0 : index
    %41 = vector.load %arg6[%c0_23, %c0_24, %c0_25, %c0_26] : memref<1x3x2x128xf32, #tpu.memory_space<vmem>>, vector<1x1x2x128xf32>
    %42 = vector.shape_cast %41 : vector<1x1x2x128xf32> to vector<1x2x128xf32>
    %43 = vector.shape_cast %40 : vector<1x2x128xf32> to vector<1x1x2x128xf32>
    tpu.vector_store %arg6[%c0_23, %c0_24, %c0_25, %c0_26], %43 {strides = array<i32>} : memref<1x3x2x128xf32, #tpu.memory_space<vmem>>, vector<1x1x2x128xf32>,
    %44 = vector.broadcast %1 : f32 to vector<1x2x128xf32>
    %45 = arith.mulf %44, %13 : vector<1x2x128xf32>
    %46 = vector.broadcast %4 : f32 to vector<1x2x128xf32>
    %47 = arith.mulf %46, %15 : vector<1x2x128xf32>
    %48 = arith.addf %45, %47 : vector<1x2x128xf32>
    %49 = vector.broadcast %7 : f32 to vector<1x2x128xf32>
    %50 = arith.mulf %49, %17 : vector<1x2x128xf32>
    %51 = arith.addf %48, %50 : vector<1x2x128xf32>
    %52 = vector.broadcast %10 : f32 to vector<1x2x128xf32>
    %53 = arith.addf %51, %52 : vector<1x2x128xf32>
    %cst_27 = arith.constant 0.000000e+00 : f32
    %54 = vector.broadcast %cst_27 : f32 to vector<1x2x128xf32>
    %55 = arith.maximumf %53, %54 : vector<1x2x128xf32>
    %cst_28 = arith.constant 3.000000e+00 : f32
    %56 = vector.broadcast %cst_28 : f32 to vector<1x2x128xf32>
    %57 = arith.mulf %56, %55 : vector<1x2x128xf32>
    %cst_29 = arith.constant 1.200000e+01 : f32
    %58 = vector.broadcast %cst_29 : f32 to vector<1x2x128xf32>
    %59 = arith.addf %57, %58 : vector<1x2x128xf32>
    %c0_30 = arith.constant 0 : index
    %c1_31 = arith.constant 1 : index
    %c0_32 = arith.constant 0 : index
    %c0_33 = arith.constant 0 : index
    %60 = vector.load %arg5[%c0_30, %c1_31, %c0_32, %c0_33] : memref<1x3x2x128xf32, #tpu.memory_space<vmem>>, vector<1x1x2x128xf32>
    %61 = vector.shape_cast %60 : vector<1x1x2x128xf32> to vector<1x2x128xf32>
    %62 = vector.shape_cast %59 : vector<1x2x128xf32> to vector<1x1x2x128xf32>
    tpu.vector_store %arg5[%c0_30, %c1_31, %c0_32, %c0_33], %62 {strides = array<i32>} : memref<1x3x2x128xf32, #tpu.memory_space<vmem>>, vector<1x1x2x128xf32>,
    %cst_34 = arith.constant 3.000000e+00 : f32
    %63 = vector.broadcast %cst_34 : f32 to vector<1x2x128xf32>
    %64 = arith.mulf %63, %55 : vector<1x2x128xf32>
    %cst_35 = arith.constant 6.000000e+00 : f32
    %65 = vector.broadcast %cst_35 : f32 to vector<1x2x128xf32>
    %66 = arith.subf %64, %65 : vector<1x2x128xf32>
    %c0_36 = arith.constant 0 : index
    %c1_37 = arith.constant 1 : index
    %c0_38 = arith.constant 0 : index
    %c0_39 = arith.constant 0 : index
    %67 = vector.load %arg6[%c0_36, %c1_37, %c0_38, %c0_39] : memref<1x3x2x128xf32, #tpu.memory_space<vmem>>, vector<1x1x2x128xf32>
    %68 = vector.shape_cast %67 : vector<1x1x2x128xf32> to vector<1x2x128xf32>
    %69 = vector.shape_cast %66 : vector<1x2x128xf32> to vector<1x1x2x128xf32>
    tpu.vector_store %arg6[%c0_36, %c1_37, %c0_38, %c0_39], %69 {strides = array<i32>} : memref<1x3x2x128xf32, #tpu.memory_space<vmem>>, vector<1x1x2x128xf32>,
    %70 = vector.broadcast %2 : f32 to vector<1x2x128xf32>
    %71 = arith.mulf %70, %13 : vector<1x2x128xf32>
    %72 = vector.broadcast %5 : f32 to vector<1x2x128xf32>
    %73 = arith.mulf %72, %15 : vector<1x2x128xf32>
    %74 = arith.addf %71, %73 : vector<1x2x128xf32>
    %75 = vector.broadcast %8 : f32 to vector<1x2x128xf32>
    %76 = arith.mulf %75, %17 : vector<1x2x128xf32>
    %77 = arith.addf %74, %76 : vector<1x2x128xf32>
    %78 = vector.broadcast %11 : f32 to vector<1x2x128xf32>
    %79 = arith.addf %77, %78 : vector<1x2x128xf32>
    %cst_40 = arith.constant 0.000000e+00 : f32
    %80 = vector.broadcast %cst_40 : f32 to vector<1x2x128xf32>
    %81 = arith.maximumf %79, %80 : vector<1x2x128xf32>
    %cst_41 = arith.constant 3.000000e+00 : f32
    %82 = vector.broadcast %cst_41 : f32 to vector<1x2x128xf32>
    %83 = arith.mulf %82, %81 : vector<1x2x128xf32>
    %cst_42 = arith.constant 1.200000e+01 : f32
    %84 = vector.broadcast %cst_42 : f32 to vector<1x2x128xf32>
    %85 = arith.addf %83, %84 : vector<1x2x128xf32>
    %c0_43 = arith.constant 0 : index
    %c2_44 = arith.constant 2 : index
    %c0_45 = arith.constant 0 : index
    %c0_46 = arith.constant 0 : index
    %86 = vector.load %arg5[%c0_43, %c2_44, %c0_45, %c0_46] : memref<1x3x2x128xf32, #tpu.memory_space<vmem>>, vector<1x1x2x128xf32>
    %87 = vector.shape_cast %86 : vector<1x1x2x128xf32> to vector<1x2x128xf32>
    %88 = vector.shape_cast %85 : vector<1x2x128xf32> to vector<1x1x2x128xf32>
    tpu.vector_store %arg5[%c0_43, %c2_44, %c0_45, %c0_46], %88 {strides = array<i32>} : memref<1x3x2x128xf32, #tpu.memory_space<vmem>>, vector<1x1x2x128xf32>,
    %cst_47 = arith.constant 3.000000e+00 : f32
    %89 = vector.broadcast %cst_47 : f32 to vector<1x2x128xf32>
    %90 = arith.mulf %89, %81 : vector<1x2x128xf32>
    %cst_48 = arith.constant 6.000000e+00 : f32
    %91 = vector.broadcast %cst_48 : f32 to vector<1x2x128xf32>
    %92 = arith.subf %90, %91 : vector<1x2x128xf32>
    %c0_49 = arith.constant 0 : index
    %c2_50 = arith.constant 2 : index
    %c0_51 = arith.constant 0 : index
    %c0_52 = arith.constant 0 : index
    %93 = vector.load %arg6[%c0_49, %c2_50, %c0_51, %c0_52] : memref<1x3x2x128xf32, #tpu.memory_space<vmem>>, vector<1x1x2x128xf32>
    %94 = vector.shape_cast %93 : vector<1x1x2x128xf32> to vector<1x2x128xf32>
    %95 = vector.shape_cast %92 : vector<1x2x128xf32> to vector<1x1x2x128xf32>
    tpu.vector_store %arg6[%c0_49, %c2_50, %c0_51, %c0_52], %95 {strides = array<i32>} : memref<1x3x2x128xf32, #tpu.memory_space<vmem>>, vector<1x1x2x128xf32>,
    return
  }
  func.func @transform_0(%arg0: i32, %arg1: i32) -> i32 {
    %c0_i32 = arith.constant 0 : i32
    %c0_i32_0 = arith.constant 0 : i32
    return %c0_i32 : i32
  }
  func.func @transform_1(%arg0: i32, %arg1: i32) -> i32 {
    %c0_i32 = arith.constant 0 : i32
    %c0_i32_0 = arith.constant 0 : i32
    return %c0_i32 : i32
  }
  func.func @transform_2(%arg0: i32, %arg1: i32) -> (i32, i32, i32, i32) {
    %c0_i32 = arith.constant 0 : i32
    %c0_i32_0 = arith.constant 0 : i32
    %c0_i32_1 = arith.constant 0 : i32
    return %arg0, %c0_i32, %arg1, %c0_i32_0 : i32, i32, i32, i32
  }
  func.func @transform_3(%arg0: i32, %arg1: i32) -> (i32, i32, i32, i32) {
    %c0_i32 = arith.constant 0 : i32
    %c0_i32_0 = arith.constant 0 : i32
    %c0_i32_1 = arith.constant 0 : i32
    return %arg0, %c0_i32, %arg1, %c0_i32_0 : i32, i32, i32, i32
  }
  func.func @transform_4(%arg0: i32, %arg1: i32) -> (i32, i32, i32, i32) {
    %c0_i32 = arith.constant 0 : i32
    %c0_i32_0 = arith.constant 0 : i32
    %c0_i32_1 = arith.constant 0 : i32
    return %arg0, %c0_i32, %arg1, %c0_i32_0 : i32, i32, i32, i32
  }
}

</mosaic_0001>

<bundles_post_ra>
// kernel: tpu_custom_call.1
= control target key start
LH: loop header
LB: loop body
LE: loop exit
PB: predicated region body
PF: predicated region fallthrough
CT: control target
= control target key end

     0   :  { %s1058_s0 = inlined_call_operand.hbm [shape: f32[9], index: 0, kind: input, shape index: {}]   ;;  %s1059_s1 = inlined_call_operand.hbm [shape: f32[3], index: 1, kind: input, shape index: {}]   ;;  %s1060_s2 = inlined_call_operand.hbm [shape: f32[2,3,2,128], index: 2, kind: input, shape index: {}]   ;;  %s1061_s3 = inlined_call_operand.hbm [shape: f32[2,3,2,128], index: 3, kind: output, shape index: {0}]   ;;  %s1062_s4 = inlined_call_operand.hbm [shape: f32[2,3,2,128], index: 4, kind: output, shape index: {1}]  }
   0x1   :  { %1063 = sst [smem:[#allocation17_spill]] %s1058_s0 }
   0x2   :  { %1064 = sst [smem:[#allocation18_spill]] %s1059_s1 }
   0x3   :  { %10 = vsyncpa [#allocation5], 0 }
   0x4   :  { %11 = vsyncpa [#allocation7], 0 }
   0x5   :  { %12 = vsyncpa [#allocation3], 0 }
   0x6   :  { %14 = vsyncpa [#allocation3 + $0x1], 0 }
   0x7   :  { %15 = vsyncpa [#allocation4], 0 }
   0x8   :  { %17 = vsyncpa [#allocation4 + $0x1], 0 }
   0x9   :  { %18 = vsyncpa [#allocation11], 0 }
   0xa   :  { %20 = vsyncpa [#allocation11 + $0x1], 0  ;;  %s871_s15 = smov 0   ;;  %s873_s16 = smov 0  }
   0xb   :  { %s875_s17 = smov 0   ;;  %s877_s18 = smov 0  }
   0xc   :  { %s879_s19 = smov 0   ;;  %s881_s20 = smov 0  }
   0xd LB: > { %s526_s21 = sadd.s32 4294967295, %s838_s20   ;;  %s527_s22 = sadd.s32 4294967294, %s838_s20   ;;  %s838_s20 = sphi %s881_s20, %s26_s20   ;;  %s834_s19 = sphi %s879_s19, %s1078_s19   ;;  %s830_s18 = sphi %s877_s18, %s1077_s18   ;;  %s826_s17 = sphi %s875_s17, %s1076_s17   ;;  %s822_s16 = sphi %s873_s16, %s1075_s16   ;;  %s818_s15 = sphi %s871_s15, %s1074_s15  }
   0xe   : > { %s89_s23 = sadd.s32 1, %s826_s17  ;;  %p96_p0 = scmp.ne.s32.totalorder %s826_s17, %s822_s16 }
   0xf   : > { %p97_p1 = scmp.eq.s32.totalorder %s838_s20, 0  ;;  %p102_p2 = scmp.ne.s32.totalorder %s822_s16, %s818_s15 }
  0x10   : > { %p909_p3 = scmp.eq.s32.totalorder %s526_s21, 0  ;;  %p128_p4 = scmp.eq.s32.totalorder %s526_s21, 1 }
  0x11   : > { %p913_p5 = por %p97_p1, %p96_p0  ;;  %p134_p6 = scmp.eq.s32.totalorder %s527_s22, 1 }
  0x12   : > { %p919_p7 = por %p909_p3, %p102_p2  ;;  %p923_p8 = por %p128_p4, %p96_p0 }
  0x13   : > { %p927_p9 = por %p134_p6, %p102_p2  ;;  %p528_p10 = scmp.ge.s32.totalorder %s838_s20, 1 }
  0x14   : > { %p169_p11 = scmp.lt.s32.totalorder %s838_s20, 3  ;;  %s1070_s0 = sld [smem:[#allocation17_spill]] }
  0x15   : > { %p531_p13 = scmp.ge.s32.totalorder %s838_s20, 2  ;;  %p598_p0 = scmp.lt.s32.totalorder %s838_s20, 2 }
  0x16   : > { %p936_p12 = pnand %p528_p10, %p169_p11  ;;  %s1072_s1 = sld [smem:[#allocation18_spill]] }
  0x17   : > { %p949_p2 = pnand %p598_p0, %p913_p5  ;;  %s840_s11 = smov [#allocation2]  }
  0x18   : > { %p578_p1 = pneg %p936_p12  ;;  %s841_s12 = smov [#allocation6]  }
  0x19   : > { %s38_s13 = sadd.s32 1, %s834_s19  ;;  %s202_s14 = sand.u32 1, %s826_s17  }
  0x1a   : > { %s181_s5 = sshll.u32 %s1070_s0, 4  ;;  %p579_p4 = pnand %p578_p1, %p909_p3  ;;  %s182_s5 = int_to_ptr.hbm [resolvable:$true] %s181_s5 }
  0x1b   : > { %p40_p6 = scmp.ge.s32.totalorder %s38_s13, 2  ;;  %s559_s21 = smul.u32 6, %s202_s14 }
  0x1c   : > { %s191_s9 = sshll.u32 %s1072_s1, 4  ;;  %s560_s22 = smul.u32 6, %s834_s19  ;;  %s192_s9 = int_to_ptr.hbm [resolvable:$true] %s191_s9 }
  0x1d   : > { %581 = dma.hbm_to_smem (!%p579_p4), %s182_s5, 16, %s840_s11, [#allocation5]  }
  0x1e   : > { %584 = dma.hbm_to_smem (!%p579_p4), %s192_s9, 16, %s841_s12, [#allocation7]  }
  0x1f   : > { %s1080_s13 = smov (%p40_p6, %s38_s13), 0  ;;  %s206_s29 = scalar_lea.vmem [#allocation8], %s559_s21 }
  0x20   : > { %s84_s25 = ssub.s32 %s834_s19, %s1080_s13  ;;  %s215_s30 = sshll.u32 %s206_s29, 4  ;;  %s216_s30 = int_to_ptr.vmem [resolvable:$true] %s215_s30 }
  0x21   : > { %p87_p5 = scmp.eq.s32.totalorder %s84_s25, 0  ;;  %s212_s5 = scalar_lea.hbm %s1060_s2, %s560_s22 }
  0x22   : > { %s213_s11 = sshll.u32 %s212_s5, 4  ;;  %s203_s12 = scalar_lea.sflag [#allocation3], %s202_s14  ;;  %s214_s11 = int_to_ptr.hbm [resolvable:$true] %s213_s11 }
  0x23   : > { %s968_s9 = scalar_select %p87_p5, %s826_s17, %s89_s23  }
  0x24   : > { %s842_s0 = smov 32   ;;  %s843_s1 = smov 2  }
  0x25   : > { %588 = dma.hbm_to_vmem [thread:$0]  (!%p949_p2), %s214_s11, 96, %s216_s30, %s203_s12, %s842_s0, %s842_s0, %s843_s1  }
  0x26   : > { %227 = sbr.rel (%p936_p12) target bundleno = 100 (0x64), region = 32 }
  0x2b   : > { %797 = dma.done.wait (%p909_p3), [#allocation5], 16  }
  0x2c   : > { %799 = vsyncadd (%p909_p3), [#allocation5], 4294967280 }
  0x2d   : > { %801 = dma.done.wait (%p909_p3), [#allocation7], 16  }
  0x2e   : > { %803 = vsyncadd (%p909_p3), [#allocation7], 4294967280  ;;  %s983_s23 = sand.u32 1, %s822_s16  }
  0x2f   : > { %s986_s0 = smul.u32 6, %s983_s23  ;;  %s240_s1 = scalar_lea.sflag [#allocation3], %s983_s23 }
  0x31   : > { %s243_s6 = scalar_lea.vmem [#allocation8], %s986_s0 }
  0x32   : > { %805 = dma.done.wait (%p919_p7), %s240_s1, 96  }
  0x33   : > { %807 = vsyncadd (%p919_p7), %s240_s1, 4294967200 }
  0x34   : > { %249 = sfence }
  0x35   : > { %s275_s10 = sld [smem:[#allocation2]]  ;;  %v287_v0 = vld [vmem:[%s243_s6] sm:$0x3]  ;;  %v546_v1 = vld [vmem:[%s243_s6 + $0x2] sm:$0x3]  ;;  %s562_s11 = smul.u32 6, %s830_s18 }
  0x36   : > { %s538_s24 = sld [smem:[#allocation2 + $0x3]]  ;;  %v547_v2 = vld [vmem:[%s243_s6 + $0x4] sm:$0x3]  ;;  %s267_s12 = scalar_lea.vmem [#allocation9], %s986_s0 }
  0x37   : > { %s541_s14 = sld [smem:[#allocation2 + $0x6]]  ;;  %s363_s1 = sshll.u32 %s267_s12, 4  ;;  %s1003_s1 = int_to_ptr.vmem [resolvable:$true] %s363_s1 }
  0x38   : > { %s284_s21 = sld [smem:[#allocation6]]  ;;  %s274_s6 = scalar_lea.vmem [#allocation10], %s986_s0 }
  0x39   : > { %s536_s22 = sld [smem:[#allocation2 + $0x1]] }
  0x3a   : > { %s539_s25 = sld [smem:[#allocation2 + $0x4]] }
  0x3b   : > { %v292_v3 = vstv %s275_s10  ;;  %s542_s29 = sld [smem:[#allocation2 + $0x7]] }
  0x3c   : > { %v293_v4 = vmul.f32 %v292_v3, %v287_v0  ;;  %v294_v5 = vstv %s538_s24  ;;  %s544_s30 = sld [smem:[#allocation6 + $0x1]] }
  0x3d   : > { %v295_v6 = vmul.f32 %v546_v1, %v294_v5  ;;  %v297_v7 = vstv %s541_s14  ;;  %s537_s7 = sld [smem:[#allocation2 + $0x2]]  ;;  %s362_s14 = scalar_lea.hbm %s1061_s3, %s562_s11 }
  0x3e   : > { %v298_v8 = vmul.f32 %v547_v2, %v297_v7  ;;  %s540_s26 = sld [smem:[#allocation2 + $0x5]]  ;;  %v300_v11 = vstv %s284_s21  ;;  %s381_s21 = sshll.u32 %s274_s6, 4  ;;  %s1005_s21 = int_to_ptr.vmem [resolvable:$true] %s381_s21 }
  0x3f   : > { %v296_v9 = vadd.f32 %v295_v6, %v293_v4  ;;  %v308_v10 = vstv %s536_s22  ;;  %s543_s8 = sld [smem:[#allocation2 + $0x8]]  ;;  %s365_s0 = sshll.u32 %s362_s14, 4  ;;  %s366_s0 = int_to_ptr.hbm [resolvable:$true] %s365_s0 }
  0x40   : > { %v309_v12 = vmul.f32 %v308_v10, %v287_v0  ;;  %v310_v13 = vstv %s539_s25  ;;  %s545_s5 = sld [smem:[#allocation6 + $0x2]]  ;;  %s380_s25 = scalar_lea.hbm %s1062_s4, %s562_s11 }
  0x41   : > { %v299_v14 = vadd.f32 %v298_v8, %v296_v9  ;;  %v311_v15 = vmul.f32 %v546_v1, %v310_v13  ;;  %v313_v16 = vstv %s542_s29  ;;  %s383_s29 = sshll.u32 %s380_s25, 4  ;;  %s736_s11 = scalar_lea.hbm %s1061_s3, 12  ;;  %s1007_s29 = int_to_ptr.hbm [resolvable:$true] %s383_s29 }
  0x42   : > { %v314_v17 = vmul.f32 %v547_v2, %v313_v16  ;;  %v316_v21 = vstv %s544_s30  ;;  %s345_s30 = scalar_lea.sflag [#allocation4], %s983_s23 }
  0x43   : > { %v301_v18 = vadd.f32 %v300_v11, %v299_v14  ;;  %v312_v19 = vadd.f32 %v311_v15, %v309_v12  ;;  %v326_v20 = vstv %s537_s7  ;;  %s730_s7 = sshra.s32 %s366_s0, 4  ;;  %s731_s7 = int_to_ptr.hbm [resolvable:$true] %s730_s7 }
  0x44   : > { %v327_v22 = vmul.f32 %v326_v20, %v287_v0  ;;  %v328_v23 = vstv %s540_s26  ;;  %s732_s26 = scalar_lea.hbm %s731_s7, 6  ;;  %p737_p11 = scmp.lt.s32.totalorder %s731_s7, %s1061_s3 }
  0x45   : > { %v302_v24 = vmax.f32 %v301_v18, 0.0  ;;  %v315_v25 = vadd.f32 %v314_v17, %v312_v19  ;;  %v329_v26 = vmul.f32 %v546_v1, %v328_v23  ;;  %v331_v27 = vstv %s543_s8  ;;  %p733_p3 = scmp.ne.s32.totalorder %s731_s7, %s732_s26  ;;  %p738_p12 = scmp.lt.s32.totalorder %s736_s11, %s732_s26 }
  0x46   : > { %v332_v28 = vmul.f32 %v547_v2, %v331_v27  ;;  %v334_v32 = vstv %s545_s5 }
  0x47   : > { %v303_v29 = vmul.f32 3.0, %v302_v24  ;;  %v317_v30 = vadd.f32 %v316_v21, %v315_v25  ;;  %v330_v31 = vadd.f32 %v329_v26, %v327_v22  ;;  %p734_p7 = pnand %p733_p3, %p923_p8  ;;  %p739_p0 = por %p738_p12, %p737_p11 }
  0x49   : > { %v304_v33 = vadd.f32 12.0, %v303_v29  ;;  %v548_v34 = vadd.f32 -6.0, %v303_v29  ;;  %v318_v35 = vmax.f32 %v317_v30, 0.0  ;;  %v333_v36 = vadd.f32 %v332_v28, %v330_v31  ;;  %p735_p10 = pneg %p734_p7 }
  0x4b   : > { %305 = vst [vmem:[%s267_s12] sm:$0x3] %v304_v33  ;;  %v319_v37 = vmul.f32 3.0, %v318_v35  ;;  %v335_v38 = vadd.f32 %v334_v32, %v333_v36  ;;  %p740_p1 = pnand %p739_p0, %p735_p10 }
  0x4c   : > { %307 = vst [vmem:[%s274_s6] sm:$0x3] %v548_v34 }
  0x4d   : > { %v320_v39 = vadd.f32 12.0, %v319_v37  ;;  %v550_v40 = vadd.f32 -6.0, %v319_v37  ;;  %v336_v41 = vmax.f32 %v335_v38, 0.0 }
  0x4f   : > { %549 = vst [vmem:[%s267_s12 + $0x2] sm:$0x3] %v320_v39  ;;  %v337_v42 = vmul.f32 3.0, %v336_v41 }
  0x50   : > { %551 = vst [vmem:[%s274_s6 + $0x2] sm:$0x3] %v550_v40 }
  0x51   : > { %v338_v43 = vadd.f32 12.0, %v337_v42  ;;  %v553_v44 = vadd.f32 -6.0, %v337_v42 }
  0x53   : > { %552 = vst [vmem:[%s267_s12 + $0x4] sm:$0x3] %v338_v43 }
  0x54   : > { %554 = vst [vmem:[%s274_s6 + $0x4] sm:$0x3] %v553_v44 }
  0x55   : > { %743 = shalt.err (!%p740_p1)
}
  0x56   : > { %s844_s12 = smov 32   ;;  %s845_s6 = smov 2  }
  0x57   : > { %574 = dma.vmem_to_hbm [thread:$0]  (%p923_p8), %s1003_s1, 96, %s366_s0, %s345_s30, %s844_s12, %s844_s12, %s845_s6  }
  0x58   : > { %s350_s14 = scalar_lea.sflag [#allocation11], %s983_s23  ;;  %s758_s18 = sshra.s32 %s1007_s29, 4  ;;  %s759_s18 = int_to_ptr.hbm [resolvable:$true] %s758_s18 }
  0x59   : > { %s760_s22 = scalar_lea.hbm %s759_s18, 6  ;;  %s764_s26 = scalar_lea.hbm %s1062_s4, 12 }
  0x5a   : > { %p761_p2 = scmp.ne.s32.totalorder %s759_s18, %s760_s22  ;;  %p765_p5 = scmp.lt.s32.totalorder %s759_s18, %s1062_s4 }
  0x5b   : > { %p766_p3 = scmp.lt.s32.totalorder %s764_s26, %s760_s22 }
  0x5c   : > { %p762_p4 = pnand %p761_p2, %p923_p8 }
  0x5d   : > { %p767_p7 = por %p766_p3, %p765_p5 }
  0x5e   : > { %p763_p6 = pneg %p762_p4 }
  0x60   : > { %p768_p10 = pnand %p767_p7, %p763_p6 }
  0x62   : > { %771 = shalt.err (!%p768_p10)
}
  0x63   : > { %575 = dma.vmem_to_hbm [thread:$0]  (%p923_p8), %s1005_s21, 96, %s1007_s29, %s350_s14, %s844_s12, %s844_s12, %s845_s6  }
  0x64 PF: > { %s398_s23 = sand.u32 1, %s818_s15   ;;  %p590_p11 = pnand %p531_p13, %p927_p9 }
  0x65   : > { %s399_s1 = scalar_lea.sflag [#allocation4], %s398_s23 }
  0x66   : > { %p591_p12 = pneg %p590_p11 }
  0x68   : > { %809 = dma.done.wait (%p591_p12), %s399_s1, 96  }
  0x69   : > { %811 = vsyncadd (%p591_p12), %s399_s1, 4294967200  ;;  %s409_s0 = scalar_lea.sflag [#allocation11], %s398_s23 }
  0x6a   : > { %813 = dma.done.wait (%p591_p12), %s409_s0, 96  }
  0x6b   : > { %815 = vsyncadd (%p591_p12), %s409_s0, 4294967200  ;;  %s26_s20 = sadd.s32 1, %s838_s20   ;;  %s1074_s15 = smov %s822_s16 }
  0x6c   : > { %p23_p0 = scmp.ge.s32.totalorder %s26_s20, 4   ;;  %s1075_s16 = smov %s826_s17 }
  0x6d   : > { %s1076_s17 = smov %s968_s9  ;;  %s1077_s18 = smov %s834_s19 }
  0x6e   : > { %s1078_s19 = smov %s1080_s13  ;;  %25 = sbr.rel (!%p23_p0) target bundleno = 13 (0xd), region = 109 }
  0x73   :  { %415 = vsyncpa [#allocation3], 1 }
  0x74   :  { %417 = vsyncpa [#allocation3 + $0x1], 1 }
  0x75   :  { %418 = vsyncpa [#allocation4], 1 }
  0x76   :  { %420 = vsyncpa [#allocation4 + $0x1], 1 }
  0x77   :  { %421 = vsyncpa [#allocation11], 1 }
  0x78   :  { %423 = vsyncpa [#allocation11 + $0x1], 1 }
  0x79   :  { %424 = vsyncpa [#allocation5], 1 }
  0x7a   :  { %426 = vsyncpa [#allocation5 + $0x1], 1 }
  0x7b   :  { %427 = vsyncpa [#allocation7], 1 }

</bundles_post_ra>
